<compile_context>
chip_gen: v6e
topology: v6e:2x2x1
jax: 0.10.0
libtpu: 0.0.40
codegen_flags: <defaults>
</compile_context>

<pallas_src>
import functools

import jax
import jax.numpy as jnp
from jax.experimental import pallas as pl
from jax.experimental.pallas import tpu as pltpu

IN_FEATS = 8
H0, H1 = 32, 64            # hidden_dims
OUT_FEATS = 128
REP = H1 // H0             # torch .repeat factor (=2)

AT_W = 16                  # packed [time | agent | zero-pad] lane width
LANES = 128
SLAB_W = 2 * LANES         # 256-lane slab feeds the 256-wide v6e/v7x MXU

# ---- bf16 weight-slab row layout (offsets multiples of 8; 256 lanes wide) ----
R_IN = 0                # 16 rows: lanes 0:128  -> row 0 (time) = 0, rows 1:9 = aw1
                        #          lanes 128:256 rows 0:8 = pw1
R_A2F = R_IN + 16       # 128 rows: lanes 0:64 rows 0:32 = aw2 ; lanes 128:256 rows 0:32 = cwa[:32]+cwa[32:]
R_P2F = R_A2F + 128     # 128 rows: lanes 0:64 rows 0:32 = pw2 ; lanes 128:256 rows 0:32 = cwp[:32]+cwp[32:]
R_C2 = R_P2F + 128      # 128 rows: lanes 0:128 rows 0:64 = cwa ; lanes 128:256 rows 0:64 = cwp
R_TOTAL = R_C2 + 128    # 400 rows x 256 lanes bf16 ~= 200 KiB (resident, fetched once)

# ---- f32 misc-slab rows (biases / cwt / cb stay full precision) ----
M_AB1, M_PB1, M_AB2, M_PB2, M_CB, M_CWT = 0, 1, 2, 3, 4, 5
M_ROWS = 8


def context_encoder_kernel(at_ref, peers_ref, w_ref, m_ref, out_ref, *, tb, n):
    relu = lambda v: jnp.maximum(v, 0.0)

    def dot(a, w):  # bf16 MXU matmul, f32 accumulate
        return jnp.dot(a.astype(jnp.bfloat16), w, preferred_element_type=jnp.float32)

    at = at_ref[...]                         # (tb, 16): lane 0 = time, lanes 1:9 = agent
    pr = peers_ref[...]                      # (tb*n, 8)

    b1a = m_ref[M_AB1:M_AB1 + 1, :]
    b1p = m_ref[M_PB1:M_PB1 + 1, :]
    b2a = m_ref[M_AB2:M_AB2 + 1, :]
    b2p = m_ref[M_PB2:M_PB2 + 1, :]
    cb = m_ref[M_CB:M_CB + 1, :]
    cwt = m_ref[M_CWT:M_CWT + 1, :]

    # ---- agent branch (unused lanes stay exactly 0 by construction) ----
    ag_x = relu(dot(at, w_ref[R_IN:R_IN + AT_W, 0:LANES]) + b1a)         # (tb,128) lanes 0:32
    ag_f = dot(ag_x, w_ref[R_A2F:R_A2F + LANES, :])                      # (tb,256) fused [A2|CA1]
    ag_x1 = relu(ag_f[:, 0:LANES] + b2a)                                 # (tb,128) lanes 0:64
    ag_ctx = ag_f[:, LANES:SLAB_W] + dot(ag_x1, w_ref[R_C2:R_C2 + LANES, 0:LANES])

    # ---- peer branch: all tb*n peer rows at once ----
    p_x = relu(dot(pr, w_ref[R_IN:R_IN + IN_FEATS, LANES:SLAB_W]) + b1p)  # (tb*n,128)
    p_f = dot(p_x, w_ref[R_P2F:R_P2F + LANES, :])                         # (tb*n,256) fused [P2|CP1]
    p_x1 = relu(p_f[:, 0:LANES] + b2p)                                    # (tb*n,128)
    pc = p_f[:, LANES:SLAB_W] + dot(p_x1, w_ref[R_C2:R_C2 + LANES, LANES:SLAB_W])  # (tb*n,128)

    # per-sample sum over each sample's n peer rows: sublane-split reshape + reduce
    # (lane dim untouched -> no relayout; replaces the old one-hot seg matmul).
    p_ctx = jnp.sum(pc.reshape(tb, n, OUT_FEATS), axis=1)                 # (tb,128)

    # time term on the VPU: time column (lane 0 of `at`) * cwt row — no MXU.
    t_col = at[:, 0:1]                                                    # (tb,1) f32

    out_ref[...] = relu(t_col * cwt + ag_ctx + p_ctx + cb)


def init_params(key):
    """PyTorch-default-style uniform(-1/sqrt(fan_in), 1/sqrt(fan_in)) init.
    Weights stored already transposed to (in, out)."""
    def linear(k, fan_in, fan_out):
        kw, kb = jax.random.split(k)
        lim = 1.0 / jnp.sqrt(fan_in)
        w = jax.random.uniform(kw, (fan_in, fan_out), jnp.float32, -lim, lim)
        b = jax.random.uniform(kb, (1, fan_out), jnp.float32, -lim, lim)
        return w, b

    ks = jax.random.split(key, 5)
    aw1, ab1 = linear(ks[0], IN_FEATS, H0)
    aw2, ab2 = linear(ks[1], H0, H1)
    pw1, pb1 = linear(ks[2], IN_FEATS, H0)
    pw2, pb2 = linear(ks[3], H0, H1)
    cw, cb = linear(ks[4], 2 * H1 + 1, OUT_FEATS)               # (129, 128)
    return dict(aw1=aw1, ab1=ab1, aw2=aw2, ab2=ab2,
                pw1=pw1, pb1=pb1, pw2=pw2, pb2=pb2,
                cwt=cw[0:1, :], cwa=cw[1:1 + H1, :], cwp=cw[1 + H1:, :], cb=cb)


def pack_weights(p):
    """Pack weights into one bf16 (R_TOTAL, 256) slab + one f32 (8, 128) misc slab."""
    def put(s, r0, c0, blk):
        r, c = blk.shape
        return s.at[r0:r0 + r, c0:c0 + c].set(blk)

    w = jnp.zeros((R_TOTAL, SLAB_W), jnp.float32)
    w = put(w, R_IN + 1, 0, p["aw1"])                           # row 0 (time) stays 0
    w = put(w, R_IN, LANES, p["pw1"])
    w = put(w, R_A2F, 0, p["aw2"])
    w = put(w, R_A2F, LANES, p["cwa"][:H0] + p["cwa"][H0:])     # fold torch .repeat
    w = put(w, R_P2F, 0, p["pw2"])
    w = put(w, R_P2F, LANES, p["cwp"][:H0] + p["cwp"][H0:])
    w = put(w, R_C2, 0, p["cwa"])
    w = put(w, R_C2, LANES, p["cwp"])

    misc = jnp.zeros((M_ROWS, OUT_FEATS), jnp.float32)
    misc = put(misc, M_AB1, 0, p["ab1"])
    misc = put(misc, M_PB1, 0, p["pb1"])
    misc = put(misc, M_AB2, 0, p["ab2"])
    misc = put(misc, M_PB2, 0, p["pb2"])
    misc = put(misc, M_CB, 0, p["cb"])
    misc = put(misc, M_CWT, 0, p["cwt"])
    return w.astype(jnp.bfloat16), misc


def _pick_tb(B):
    """Largest batch tile <= 256 that divides B; prefer >= 2 grid steps (v7x has 2 TCs)."""
    cap = min(256, B)
    if B >= 16:
        cap = min(cap, B // 2)
    for t in range(cap, 0, -1):
        if B % t == 0 and (t % 8 == 0 or t == B):
            return t
    return B


def context_encoder(agent, peers, time, wslab, misc, *, tb=None):
    """Batched forward: out[b] == Context_Encoder.forward(agent[b:b+1], peers[b], time[b:b+1])."""
    B, F = agent.shape
    N = peers.shape[1]
    assert F == IN_FEATS and peers.shape == (B, N, IN_FEATS) and time.shape == (B, 1)
    if tb is None:
        tb = _pick_tb(B)
    assert B % tb == 0 and (tb % 8 == 0 or tb == B)

    # Pack [time | agent | 0-pad] -> (B, 16): `time` rides in lane 0, no extra DMA.
    at = jnp.concatenate(
        [time, agent, jnp.zeros((B, AT_W - 1 - IN_FEATS), jnp.float32)], axis=1)
    pf = peers.reshape(B * N, IN_FEATS)

    kernel = functools.partial(context_encoder_kernel, tb=tb, n=N)
    # TODO(synk): if this encoder runs every environment step, keep the ~200 KiB
    # weight slab resident across calls (cross-call prefetch / fusion into the
    # caller's kernel) instead of re-DMAing it each invocation.
    return pl.pallas_call(
        kernel,
        out_shape=jax.ShapeDtypeStruct((B, OUT_FEATS), jnp.float32),
        grid=(B // tb,),
        in_specs=[
            pl.BlockSpec((tb, AT_W), lambda i: (i, 0)),
            pl.BlockSpec((tb * N, IN_FEATS), lambda i: (i, 0)),
            pl.BlockSpec((R_TOTAL, SLAB_W), lambda i: (0, 0)),     # bf16 weights, resident
            pl.BlockSpec((M_ROWS, OUT_FEATS), lambda i: (0, 0)),   # f32 biases/cwt/cb, resident
        ],
        out_specs=pl.BlockSpec((tb, OUT_FEATS), lambda i: (i, 0)),
        compiler_params=pltpu.CompilerParams(
            dimension_semantics=("parallel",),          # shard batch tiles across TCs (v7x)
            vmem_limit_bytes=32 * 1024 * 1024),         # raise v5e's 16 MiB scoped default
    )(at, pf, wslab, misc)


def _reference(agent, peers, time, p):
    """Plain-JAX f32 reference matching the PyTorch forward, vmapped over the batch."""
    relu = lambda v: jnp.maximum(v, 0.0)

    def one(ag, pe, t):
        ag = ag[None, :]
        t = t[None, :]
        ag_x = relu(ag @ p["aw1"] + p["ab1"])
        ag_x1 = relu(ag_x @ p["aw2"] + p["ab2"])
        ag_x2 = jnp.tile(ag_x, (1, REP)) + ag_x1
        p_x = relu(pe @ p["pw1"] + p["pb1"])
        p_x1 = relu(p_x @ p["pw2"] + p["pb2"])
        p_x2 = jnp.tile(p_x, (1, REP)) + p_x1
        p_sum = jnp.sum(p_x2, axis=0, keepdims=True)
        cw = jnp.concatenate([p["cwt"], p["cwa"], p["cwp"]], axis=0)
        x = jnp.concatenate([t, ag_x2, p_sum], axis=1)
        return relu(x @ cw + p["cb"])[0]

    return jax.vmap(one)(agent, peers, time)


if __name__ == "__main__":
    key = jax.random.PRNGKey(0)
    kp, ka, kpe, kt = jax.random.split(key, 4)

    params = init_params(kp)
    wslab, misc = pack_weights(params)

    B, N = 16, 8                                              # small demo batch
    agent = jax.random.normal(ka, (B, IN_FEATS), jnp.float32)
    peers = jax.random.normal(kpe, (B, N, IN_FEATS), jnp.float32)
    time = jax.random.uniform(kt, (B, 1), jnp.float32)

    out = context_encoder(agent, peers, time, wslab, misc)    # tb=8 -> grid=(2,)
    out = jax.block_until_ready(out)

    ref = _reference(agent, peers, time, params)
    assert out.shape == (B, OUT_FEATS)
    # MXU runs native bf16 (f32 accumulate): compare with a bf16-scaled tolerance.
    max_abs = float(jnp.max(jnp.abs(ref))) + 1e-6
    assert jnp.allclose(out, ref, atol=3e-2 * max_abs, rtol=3e-2), "mismatch vs reference"

    print("KERNEL_OK")
</pallas_src>

<mosaic_0001>
module attributes {stable_mosaic.version = 11 : i64} {
  func.func @context_encoder_kernel(%arg0: i32, %arg1: memref<8x16xf32, #tpu.memory_space<vmem>>, %arg2: memref<64x8xf32, #tpu.memory_space<vmem>>, %arg3: memref<400x256xbf16, #tpu.memory_space<vmem>>, %arg4: memref<8x128xf32, #tpu.memory_space<vmem>>, %arg5: memref<8x128xf32, #tpu.memory_space<vmem>>) attributes {dimension_semantics = [#tpu.dimension_semantics<parallel>], iteration_bounds = array<i64: 2>, scalar_prefetch = 0 : i64, scratch_operands = 0 : i64, tpu.core_type = #tpu.core_type<tc>, window_params = [{transform_indices = @transform_0, window_bounds = array<i64: 8, 16>}, {transform_indices = @transform_1, window_bounds = array<i64: 64, 8>}, {pipeline_mode = #tpu.pipeline_mode<synchronous>, transform_indices = @transform_2, window_bounds = array<i64: 400, 256>}, {pipeline_mode = #tpu.pipeline_mode<synchronous>, transform_indices = @transform_3, window_bounds = array<i64: 8, 128>}, {transform_indices = @transform_4, window_bounds = array<i64: 8, 128>}]} {
    %c0 = arith.constant 0 : index
    %c0_0 = arith.constant 0 : index
    %0 = vector.load %arg1[%c0, %c0_0] : memref<8x16xf32, #tpu.memory_space<vmem>>, vector<8x16xf32>
    %c0_1 = arith.constant 0 : index
    %c0_2 = arith.constant 0 : index
    %1 = vector.load %arg2[%c0_1, %c0_2] : memref<64x8xf32, #tpu.memory_space<vmem>>, vector<64x8xf32>
    %c0_3 = arith.constant 0 : index
    %c0_4 = arith.constant 0 : index
    %2 = vector.load %arg4[%c0_3, %c0_4] : memref<8x128xf32, #tpu.memory_space<vmem>>, vector<1x128xf32>
    %c1 = arith.constant 1 : index
    %c0_5 = arith.constant 0 : index
    %3 = vector.load %arg4[%c1, %c0_5] : memref<8x128xf32, #tpu.memory_space<vmem>>, vector<1x128xf32>
    %c2 = arith.constant 2 : index
    %c0_6 = arith.constant 0 : index
    %4 = vector.load %arg4[%c2, %c0_6] : memref<8x128xf32, #tpu.memory_space<vmem>>, vector<1x128xf32>
    %c3 = arith.constant 3 : index
    %c0_7 = arith.constant 0 : index
    %5 = vector.load %arg4[%c3, %c0_7] : memref<8x128xf32, #tpu.memory_space<vmem>>, vector<1x128xf32>
    %c4 = arith.constant 4 : index
    %c0_8 = arith.constant 0 : index
    %6 = vector.load %arg4[%c4, %c0_8] : memref<8x128xf32, #tpu.memory_space<vmem>>, vector<1x128xf32>
    %c5 = arith.constant 5 : index
    %c0_9 = arith.constant 0 : index
    %7 = vector.load %arg4[%c5, %c0_9] : memref<8x128xf32, #tpu.memory_space<vmem>>, vector<1x128xf32>
    %c0_10 = arith.constant 0 : index
    %c0_11 = arith.constant 0 : index
    %8 = vector.load %arg3[%c0_10, %c0_11] : memref<400x256xbf16, #tpu.memory_space<vmem>>, vector<16x128xbf16>
    %9 = arith.truncf %0 : vector<8x16xf32> to vector<8x16xbf16>
    %cst = arith.constant dense<0.000000e+00> : vector<8x128xf32>
    %10 = tpu.matmul %9, %8, %cst {dimension_numbers = #tpu.dot_dimension_numbers<[1], [0], [0], [1], [0, 0, 1, 1], [], []>} : vector<8x16xbf16>, vector<16x128xbf16>, vector<8x128xf32> -> vector<8x128xf32>
    %11 = vector.broadcast %2 : vector<1x128xf32> to vector<8x128xf32>
    %12 = arith.addf %10, %11 : vector<8x128xf32>
    %cst_12 = arith.constant 0.000000e+00 : f32
    %13 = vector.broadcast %cst_12 : f32 to vector<8x128xf32>
    %14 = arith.maximumf %12, %13 : vector<8x128xf32>
    %c16 = arith.constant 16 : index
    %c0_13 = arith.constant 0 : index
    %15 = vector.load %arg3[%c16, %c0_13] : memref<400x256xbf16, #tpu.memory_space<vmem>>, vector<128x256xbf16>
    %16 = arith.truncf %14 : vector<8x128xf32> to vector<8x128xbf16>
    %cst_14 = arith.constant dense<0.000000e+00> : vector<8x256xf32>
    %17 = tpu.matmul %16, %15, %cst_14 {dimension_numbers = #tpu.dot_dimension_numbers<[1], [0], [0], [1], [0, 0, 1, 1], [], []>} : vector<8x128xbf16>, vector<128x256xbf16>, vector<8x256xf32> -> vector<8x256xf32>
    %18 = vector.extract_strided_slice %17 {offsets = [0, 0], sizes = [8, 128], strides = [1, 1]} : vector<8x256xf32> to vector<8x128xf32>
    %19 = vector.broadcast %4 : vector<1x128xf32> to vector<8x128xf32>
    %20 = arith.addf %18, %19 : vector<8x128xf32>
    %cst_15 = arith.constant 0.000000e+00 : f32
    %21 = vector.broadcast %cst_15 : f32 to vector<8x128xf32>
    %22 = arith.maximumf %20, %21 : vector<8x128xf32>
    %23 = vector.extract_strided_slice %17 {offsets = [0, 128], sizes = [8, 128], strides = [1, 1]} : vector<8x256xf32> to vector<8x128xf32>
    %c272 = arith.constant 272 : index
    %c0_16 = arith.constant 0 : index
    %24 = vector.load %arg3[%c272, %c0_16] : memref<400x256xbf16, #tpu.memory_space<vmem>>, vector<128x128xbf16>
    %25 = arith.truncf %22 : vector<8x128xf32> to vector<8x128xbf16>
    %cst_17 = arith.constant dense<0.000000e+00> : vector<8x128xf32>
    %26 = tpu.matmul %25, %24, %cst_17 {dimension_numbers = #tpu.dot_dimension_numbers<[1], [0], [0], [1], [0, 0, 1, 1], [], []>} : vector<8x128xbf16>, vector<128x128xbf16>, vector<8x128xf32> -> vector<8x128xf32>
    %27 = arith.addf %23, %26 : vector<8x128xf32>
    %c0_18 = arith.constant 0 : index
    %c128 = arith.constant 128 : index
    %28 = vector.load %arg3[%c0_18, %c128] : memref<400x256xbf16, #tpu.memory_space<vmem>>, vector<8x128xbf16>
    %29 = arith.truncf %1 : vector<64x8xf32> to vector<64x8xbf16>
    %cst_19 = arith.constant dense<0.000000e+00> : vector<64x128xf32>
    %30 = tpu.matmul %29, %28, %cst_19 {dimension_numbers = #tpu.dot_dimension_numbers<[1], [0], [0], [1], [0, 0, 1, 1], [], []>} : vector<64x8xbf16>, vector<8x128xbf16>, vector<64x128xf32> -> vector<64x128xf32>
    %31 = vector.broadcast %3 : vector<1x128xf32> to vector<64x128xf32>
    %32 = arith.addf %30, %31 : vector<64x128xf32>
    %cst_20 = arith.constant 0.000000e+00 : f32
    %33 = vector.broadcast %cst_20 : f32 to vector<64x128xf32>
    %34 = arith.maximumf %32, %33 : vector<64x128xf32>
    %c144 = arith.constant 144 : index
    %c0_21 = arith.constant 0 : index
    %35 = vector.load %arg3[%c144, %c0_21] : memref<400x256xbf16, #tpu.memory_space<vmem>>, vector<128x256xbf16>
    %36 = arith.truncf %34 : vector<64x128xf32> to vector<64x128xbf16>
    %cst_22 = arith.constant dense<0.000000e+00> : vector<64x256xf32>
    %37 = tpu.matmul %36, %35, %cst_22 {dimension_numbers = #tpu.dot_dimension_numbers<[1], [0], [0], [1], [0, 0, 1, 1], [], []>} : vector<64x128xbf16>, vector<128x256xbf16>, vector<64x256xf32> -> vector<64x256xf32>
    %38 = vector.extract_strided_slice %37 {offsets = [0, 0], sizes = [64, 128], strides = [1, 1]} : vector<64x256xf32> to vector<64x128xf32>
    %39 = vector.broadcast %5 : vector<1x128xf32> to vector<64x128xf32>
    %40 = arith.addf %38, %39 : vector<64x128xf32>
    %cst_23 = arith.constant 0.000000e+00 : f32
    %41 = vector.broadcast %cst_23 : f32 to vector<64x128xf32>
    %42 = arith.maximumf %40, %41 : vector<64x128xf32>
    %43 = vector.extract_strided_slice %37 {offsets = [0, 128], sizes = [64, 128], strides = [1, 1]} : vector<64x256xf32> to vector<64x128xf32>
    %c272_24 = arith.constant 272 : index
    %c128_25 = arith.constant 128 : index
    %44 = vector.load %arg3[%c272_24, %c128_25] : memref<400x256xbf16, #tpu.memory_space<vmem>>, vector<128x128xbf16>
    %45 = arith.truncf %42 : vector<64x128xf32> to vector<64x128xbf16>
    %cst_26 = arith.constant dense<0.000000e+00> : vector<64x128xf32>
    %46 = tpu.matmul %45, %44, %cst_26 {dimension_numbers = #tpu.dot_dimension_numbers<[1], [0], [0], [1], [0, 0, 1, 1], [], []>} : vector<64x128xbf16>, vector<128x128xbf16>, vector<64x128xf32> -> vector<64x128xf32>
    %47 = arith.addf %43, %46 : vector<64x128xf32>
    %48 = vector.shape_cast %47 : vector<64x128xf32> to vector<8x8x128xf32>
    %cst_27 = arith.constant dense<0.000000e+00> : vector<8x128xf32>
    %49 = vector.multi_reduction <add>, %48, %cst_27 [1] : vector<8x8x128xf32> to vector<8x128xf32>
    %50 = vector.extract_strided_slice %0 {offsets = [0, 0], sizes = [8, 1], strides = [1, 1]} : vector<8x16xf32> to vector<8x1xf32>
    %51 = vector.broadcast %50 : vector<8x1xf32> to vector<8x128xf32>
    %52 = vector.broadcast %7 : vector<1x128xf32> to vector<8x128xf32>
    %53 = arith.mulf %51, %52 : vector<8x128xf32>
    %54 = arith.addf %53, %27 : vector<8x128xf32>
    %55 = arith.addf %54, %49 : vector<8x128xf32>
    %56 = vector.broadcast %6 : vector<1x128xf32> to vector<8x128xf32>
    %57 = arith.addf %55, %56 : vector<8x128xf32>
    %cst_28 = arith.constant 0.000000e+00 : f32
    %58 = vector.broadcast %cst_28 : f32 to vector<8x128xf32>
    %59 = arith.maximumf %57, %58 : vector<8x128xf32>
    %c0_29 = arith.constant 0 : index
    %c0_30 = arith.constant 0 : index
    %60 = vector.load %arg5[%c0_29, %c0_30] : memref<8x128xf32, #tpu.memory_space<vmem>>, vector<8x128xf32>
    tpu.vector_store %arg5[%c0_29, %c0_30], %59 {strides = array<i32>} : memref<8x128xf32, #tpu.memory_space<vmem>>, vector<8x128xf32>,
    return
  }
  func.func @transform_0(%arg0: i32) -> (i32, i32) {
    %c0_i32 = arith.constant 0 : i32
    %c0_i32_0 = arith.constant 0 : i32
    return %arg0, %c0_i32 : i32, i32
  }
  func.func @transform_1(%arg0: i32) -> (i32, i32) {
    %c0_i32 = arith.constant 0 : i32
    %c0_i32_0 = arith.constant 0 : i32
    return %arg0, %c0_i32 : i32, i32
  }
  func.func @transform_2(%arg0: i32) -> (i32, i32) {
    %c0_i32 = arith.constant 0 : i32
    %c0_i32_0 = arith.constant 0 : i32
    %c0_i32_1 = arith.constant 0 : i32
    return %c0_i32, %c0_i32_0 : i32, i32
  }
  func.func @transform_3(%arg0: i32) -> (i32, i32) {
    %c0_i32 = arith.constant 0 : i32
    %c0_i32_0 = arith.constant 0 : i32
    %c0_i32_1 = arith.constant 0 : i32
    return %c0_i32, %c0_i32_0 : i32, i32
  }
  func.func @transform_4(%arg0: i32) -> (i32, i32) {
    %c0_i32 = arith.constant 0 : i32
    %c0_i32_0 = arith.constant 0 : i32
    return %arg0, %c0_i32 : i32, i32
  }
}

</mosaic_0001>

<bundles_post_ra>
// kernel: tpu_custom_call.1
= control target key start
LH: loop header
LB: loop body
LE: loop exit
PB: predicated region body
PF: predicated region fallthrough
CT: control target
= control target key end

     0   :  { %9 = vsyncpa [#allocation3], 0  ;;  %s1740_s0 = inlined_call_operand.vmem [shape: f32[16,16], index: 0, kind: input, shape index: {}]   ;;  %s1741_s1 = inlined_call_operand.vmem [shape: f32[128,8], index: 1, kind: input, shape index: {}]   ;;  %s1742_s2 = inlined_call_operand.hbm [shape: bf16[400,256], index: 2, kind: input, shape index: {}]   ;;  %s1743_s3 = inlined_call_operand.vmem [shape: f32[8,128], index: 3, kind: input, shape index: {}]   ;;  %s1744_s4 = inlined_call_operand.hbm [shape: f32[16,128], index: 4, kind: output, shape index: {}]  }
   0x1   :  { %10 = vsyncpa [#allocation4], 0 }
   0x2   :  { %12 = vsyncpa [#allocation4 + $0x1], 0  ;;  %s1582_s15 = smov 0   ;;  %s1584_s16 = smov 0  }
   0x3   :  { %s1586_s17 = smov 0   ;;  %s1588_s18 = smov 0  }
   0x4 LB: > { %s1603_s19 = sadd.s32 4294967295, %s1548_s18   ;;  %s1174_s20 = sadd.s32 4294967294, %s1548_s18   ;;  %s1548_s18 = sphi %s1588_s18, %s1752_s18   ;;  %s1544_s17 = sphi %s1586_s17, %s1751_s17   ;;  %s1540_s16 = sphi %s1584_s16, %s1750_s16   ;;  %s1536_s15 = sphi %s1582_s15, %s1749_s15  }
   0x5   : > { %s1607_s21 = sadd.s32 1, %s1548_s18   ;;  %s119_s22 = sadd.s32 1, %s1544_s17 }
   0x6   : > { %s116_s23 = ssub.s32 %s1548_s18, %s1607_s21  ;;  %p129_p0 = scmp.ne.s32.totalorder %s1544_s17, %s1540_s16 }
   0x7   : > { %p117_p1 = scmp.eq.s32.totalorder %s116_s23, 0  ;;  %p130_p2 = scmp.eq.s32.totalorder %s1603_s19, 1 }
   0x8   : > { %p135_p3 = scmp.ne.s32.totalorder %s1540_s16, %s1536_s15  ;;  %p136_p4 = scmp.eq.s32.totalorder %s1174_s20, 1 }
   0x9   : > { %s1618_s24 = scalar_select %p117_p1, %s1544_s17, %s119_s22  }
   0xa   : > { %p1620_p5 = por %p130_p2, %p129_p0  ;;  %p1624_p6 = por %p136_p4, %p135_p3 }
   0xb   : > { %p1175_p7 = scmp.ge.s32.totalorder %s1548_s18, 1  ;;  %p143_p8 = scmp.lt.s32.totalorder %s1548_s18, 3 }
   0xc   : > { %s1746_s26 = scalar_select %p1624_p6, 1, 0 }
   0xd   : > { %p1351_p9 = scmp.eq.s32.totalorder %s1603_s19, 0  ;;  %p1631_p10 = pnand %p1175_p7, %p143_p8 }
   0xe   : > { %s1550_s28 = smov [#allocation2]  }
   0xf   : > { %s155_s29 = sshll.u32 %s1550_s28, 4  ;;  %p1343_p11 = pneg %p1631_p10  ;;  %s156_s29 = int_to_ptr.vmem [resolvable:$true] %s155_s29 }
  0x10   : > { %s1469_s30 = scalar_lea.vmem %s156_s29, 6400  ;;  %p1477_p3 = scmp.lt.s32.totalorder %s156_s29, %s156_s29 }
  0x11   : > { %p1344_p12 = pnand %p1351_p9, %p1343_p11  ;;  %p1470_p0 = scmp.ne.s32.totalorder %s156_s29, %s1469_s30 }
  0x12   : > { %p1478_p4 = scmp.lt.s32.totalorder %s1469_s30, %s1469_s30 }
  0x13   : > { %p1460_p13 = pneg %p1344_p12 }
  0x14   : > { %p1479_p6 = por %p1478_p4, %p1477_p3 }
  0x15   : > { %p1472_p1 = pnand %p1470_p0, %p1460_p13 }
  0x17   : > { %p1473_p2 = pneg %p1472_p1 }
  0x19   : > { %p1480_p7 = pnand %p1479_p6, %p1473_p2 }
  0x1b   : > { %1483 = shalt.err (!%p1480_p7)
}
  0x1c   : > { %s1551_s5 = smov 128   ;;  %s1552_s6 = smov 8  }
  0x1d   : > { %1346 = dma.hbm_to_vmem [thread:$0]  (!%p1344_p12), %s1742_s2, 6400, %s156_s29, [#allocation3], %s1551_s5, %s1551_s5, %s1552_s6  }
  0x1e   : > { %190 = sbr.rel (%p1631_p10) target bundleno = 937 (0x3a9), region = 36 }
  0x23   : > { %1527 = dma.done.wait (%p1351_p9), [#allocation3], 6400  }
  0x24   : > { %1529 = vsyncadd (%p1351_p9), [#allocation3], 4294960896  ;;  %p220_p8 = scmp.lt.s32.totalorder %s1603_s19, 1  ;;  %v1553_v0 = vmov 0.0   ;;  %vm1554_vm0 = vmmov 0   ;;  %vm259_vm1 = vcmask 130048  }
  0x25   : > { %1276 = vmatprep.subr.bf16.mxu1 %v1553_v0  ;;  %1278 = vmatprep.mubr.msk.bf16.mxu1 %vm1554_vm0, %v1553_v0  ;;  %v1393_v1 = vld [vmem:[#allocation2] ss:$8 sps:$4 sm:$0xff]   ;;  %v1396_v5 = vld [vmem:[#allocation2 + $0x84] ss:$8 sps:$4 sm:$0xff]   ;;  %v1399_v6 = vld [vmem:[#allocation2 + $0x74] ss:$8 sps:$4 sm:$0xff]  }
  0x26   : > { %s221_s9 = scalar_select %p220_p8, %s1603_s19, 1  ;;  %1282 = vmatprep.subr.bf16.mxu0 %v1553_v0  ;;  %1298 = vmatprep.mubr.msk.bf16.mxu0 %vm1554_vm0, %v1553_v0  ;;  %v1394_v4 = vld [vmem:[#allocation2 + $0x80] ss:$8 sps:$4 sm:$0xff]   ;;  %v1397_v7 = vld [vmem:[#allocation2 + $0x70] ss:$8 sps:$4 sm:$0xff]   ;;  %v1555_v20 = vmov 0  }
  0x27   : > { %1277 = vmatpush3.bf16.msra.mxu1 %v1393_v1  ;;  %v1402_v8 = vld [vmem:[#allocation2 + $0x64] ss:$8 sps:$4 sm:$0xff]   ;;  %v1400_v9 = vld [vmem:[#allocation2 + $0x60] ss:$8 sps:$4 sm:$0xff]   ;;  %v1405_v10 = vld [vmem:[#allocation2 + $0x54] ss:$8 sps:$4 sm:$0xff]   ;;  %1392 = vset.pattern.permute.xlu0 %v1555_v20 }
  0x28   : > { %s1181_s10 = sshll.u32 %s221_s9, 3  ;;  %401 = vmatprep.subr.bf16.mxu1 %v1396_v5  ;;  %v1403_v11 = vld [vmem:[#allocation2 + $0x50] ss:$8 sps:$4 sm:$0xff]   ;;  %v1408_v12 = vld [vmem:[#allocation2 + $0x44] ss:$8 sps:$4 sm:$0xff]   ;;  %vm576_vm2 = vcmask 1043456  }
  0x29   : > { %s223_s13 = scalar_lea.vmem %s1740_s0, %s1181_s10  ;;  %v1406_v13 = vld [vmem:[#allocation2 + $0x40] ss:$8 sps:$4 sm:$0xff]   ;;  %v1411_v14 = vld [vmem:[#allocation2 + $0x34] ss:$8 sps:$4 sm:$0xff]   ;;  %v1409_v15 = vld [vmem:[#allocation2 + $0x30] ss:$8 sps:$4 sm:$0xff]  }
  0x2a   : > { %v231_v2 = vld [vmem:[%s223_s13] sm:$0xff]  ;;  %v1417_v18 = vld [vmem:[#allocation2 + $0x14] ss:$8 sps:$4 sm:$0xff]   ;;  %v1415_v19 = vld [vmem:[#allocation2 + $0x10] ss:$8 sps:$4 sm:$0xff]   ;;  %s1182_s14 = sshll.u32 %s1603_s19, 3 }
  0x2b   : > { %v248_v3 = vpack.c.bf16 %v231_v2, %v231_v2  ;;  %v1414_v16 = vld [vmem:[#allocation2 + $0x24] ss:$8 sps:$4 sm:$0xff]   ;;  %v1412_v17 = vld [vmem:[#allocation2 + $0x20] ss:$8 sps:$4 sm:$0xff]   ;;  %1037 = vperm.xlu0 %1392, %v231_v2   ;;  %v1419_v24 = vld [vmem:[#allocation2 + $0x170] ss:$8 sps:$4 sm:$0xff]  }
  0x2c   : > { %v554_v21 = vld [vmem:[#allocation2 + $0x4] sm:$0xf]  ;;  %v1418_v23 = vld [vmem:[#allocation2 + $0x180] ss:$8 sps:$4 sm:$0xff]   ;;  %v1421_v26 = vld [vmem:[#allocation2 + $0x150] ss:$8 sps:$4 sm:$0xff]  }
  0x2d   : > { %1279 = vmatmul.mubr.msk.bf16.vlgmr.msra.gmra.mxu1 %vm259_vm1, %v248_v3  ;;  %v578_v22 = vsel %vm576_vm2, %v554_v21, 0  ;;  %1283 = vmatpush3.bf16.msra.mxu0 %v1418_v23  ;;  %v1420_v25 = vld [vmem:[#allocation2 + $0x160] ss:$8 sps:$4 sm:$0xff]   ;;  %v1423_v28 = vld [vmem:[#allocation2 + $0x130] ss:$8 sps:$4 sm:$0xff]   ;;  %p225_p6 = scmp.lt.s32.totalorder %s1182_s14, 15 }
  0x2e   : > { %402 = vmatpush1.bf16.msra.mxu1 %v1394_v4  ;;  %433 = vmatprep.mubr.bf16.mxu1 %v1555_v20  ;;  %v1422_v27 = vld [vmem:[#allocation2 + $0x140] ss:$8 sps:$4 sm:$0xff]   ;;  %vm563_vm3 = vcmask 64512   ;;  %v1425_v50 = vld [vmem:[#allocation2 + $0x110] ss:$8 sps:$4 sm:$0xff]   ;;  %vm1054_vm4 = vcmask 1041409  }
  0x2f   : > { %403 = vmatprep.subr.bf16.mxu1 %v1399_v6  ;;  %1284 = vmatprep.subr.bf16.mxu0 %v1553_v0  ;;  %v1424_v29 = vld [vmem:[#allocation2 + $0x120] ss:$8 sps:$4 sm:$0xff]   ;;  %s1754_s14 = smov (!%p225_p6, %s1182_s14), 15  ;;  %v1428_v51 = vld [vmem:[#allocation2 + $0x104] ss:$8 sps:$4 sm:$0xff]   ;;  %vm1056_vm5 = vcmask 1042434  }
  0x30   : > { %s1183_s20 = sshll.u32 %s1754_s14, 3  ;;  %v1184_v30 = vld [vmem:[%s1743_s3] ss:$0 sm:$0xff]  ;;  %v1203_v52 = vld [vmem:[%s1743_s3 + $0x2] ss:$0 sm:$0xff]  ;;  %vm1058_vm6 = vcmask 1043459  }
  0x31   : > { %1285 = vmatpush3.bf16.msra.mxu0 %v1419_v24  ;;  %s228_s29 = scalar_lea.vmem %s1741_s1, %s1183_s20  ;;  %v1426_v58 = vld [vmem:[#allocation2 + $0x100] ss:$8 sps:$4 sm:$0xff]   ;;  %v1431_v60 = vld [vmem:[#allocation2 + $0xf4] ss:$8 sps:$4 sm:$0xff]   ;;  %v1429_v62 = vld [vmem:[#allocation2 + $0xf0] ss:$8 sps:$4 sm:$0xff]  }
  0x32   : > { %404 = vmatpush1.bf16.msra.mxu1 %v1397_v7  ;;  %1286 = vmatprep.subr.bf16.mxu0 %v1553_v0  ;;  %v232_v33 = vld [vmem:[%s228_s29] sm:$0xff]  ;;  %v233_v34 = vld [vmem:[%s228_s29 + $0x8] sm:$0xff]  ;;  %v234_v41 = vld [vmem:[%s228_s29 + $0x10] sm:$0xff]  ;;  %s217_s12 = sand.u32 1, %s1540_s16   ;;  %vm1060_vm7 = vcmask 1044484   ;;  %vm1062_vm8 = vcmask 1045509  }
  0x33   : > { %405 = vmatprep.subr.bf16.mxu1 %v1402_v8  ;;  %v555_v38 = vpack.c.bf16 %v233_v34, %v232_v33  ;;  %v235_v42 = vld [vmem:[%s228_s29 + $0x18] sm:$0xff]  ;;  %v236_v43 = vld [vmem:[%s228_s29 + $0x20] sm:$0xff]  ;;  %v237_v44 = vld [vmem:[%s228_s29 + $0x28] sm:$0xff]  ;;  %vm1064_vm9 = vcmask 1046534   ;;  %s1180_s13 = sshll.u32 %s217_s12, 3  ;;  %vm1066_vm10 = vcmask 1047559  }
  0x34   : > { %v556_v45 = vpack.c.bf16 %v235_v42, %v234_v41  ;;  %v557_v46 = vpack.c.bf16 %v237_v44, %v236_v43  ;;  %v238_v47 = vld [vmem:[%s228_s29 + $0x30] sm:$0xff]  ;;  %v239_v48 = vld [vmem:[%s228_s29 + $0x38] sm:$0xff]  ;;  %v1434_v63 = vld [vmem:[#allocation2 + $0xe4] ss:$8 sps:$4 sm:$0xff]   ;;  %s1245_s22 = sshll.u32 %s1603_s19, 7  ;;  %s219_s23 = scalar_lea.vmem [#allocation5], %s1180_s13 }
  0x35   : > { %1287 = vmatpush3.bf16.msra.mxu0 %v1420_v25  ;;  %v558_v49 = vpack.c.bf16 %v239_v48, %v238_v47  ;;  %v1437_v1 = vld [vmem:[#allocation2 + $0xd4] ss:$8 sps:$4 sm:$0xff]   ;;  %v1435_v3 = vld [vmem:[#allocation2 + $0xd0] ss:$8 sps:$4 sm:$0xff]   ;;  %v1440_v4 = vld [vmem:[#allocation2 + $0xc4] ss:$8 sps:$4 sm:$0xff]   ;;  %s1089_s30 = scalar_lea.hbm %s1744_s4, %s1245_s22 }
  0x36   : > { %406 = vmatpush1.bf16.msra.mxu1 %v1400_v9  ;;  %1288 = vmatprep.subr.bf16.mxu0 %v1553_v0  ;;  %v1438_v6 = vld [vmem:[#allocation2 + $0xc0] ss:$8 sps:$4 sm:$0xff]   ;;  %v1443_v7 = vld [vmem:[#allocation2 + $0xb4] ss:$8 sps:$4 sm:$0xff]   ;;  %v1441_v9 = vld [vmem:[#allocation2 + $0xb0] ss:$8 sps:$4 sm:$0xff]  }
  0x37   : > { %407 = vmatprep.subr.bf16.mxu1 %v1405_v10  ;;  %v1446_v10 = vld [vmem:[#allocation2 + $0xa4] ss:$8 sps:$4 sm:$0xff]   ;;  %v1451_v42 = vld [vmem:[#allocation2 + $0x174] ss:$8 sps:$4 sm:$0xff]   ;;  %s1091_s27 = sshll.u32 %s219_s23, 4  ;;  %s1078_s5 = scalar_lea.sflag [#allocation4], %s217_s12  ;;  %s1092_s27 = int_to_ptr.vmem [resolvable:$true] %s1091_s27 }
  0x38   : > { %v1450_v41 = vld [vmem:[#allocation2 + $0x184] ss:$8 sps:$4 sm:$0xff]   ;;  %v1453_v44 = vld [vmem:[#allocation2 + $0x154] ss:$8 sps:$4 sm:$0xff]   ;;  %s1484_s6 = scalar_lea.vmem %s1092_s27, 128  ;;  %s1556_s7 = smov [#allocation5]  }
  0x39   : > { %1289 = vmatpush3.bf16.msra.mxu0 %v1421_v26  ;;  %v1452_v43 = vld [vmem:[#allocation2 + $0x164] ss:$8 sps:$4 sm:$0xff]   ;;  %v1457_v47 = vld [vmem:[#allocation2 + $0x114] ss:$8 sps:$4 sm:$0xff]   ;;  %p1485_p9 = scmp.ne.s32.totalorder %s1092_s27, %s1484_s6  ;;  %s1488_s8 = sshll.u32 %s1556_s7, 4  ;;  %s1489_s8 = int_to_ptr.vmem [resolvable:$false] %s1488_s8 }
  0x3a   : > { %408 = vmatpush1.bf16.msra.mxu1 %v1403_v11  ;;  %1290 = vmatprep.subr.bf16.mxu0 %v1553_v0  ;;  %v1212_v11 = vld [vmem:[%s1743_s3 + $0x1] ss:$0 sm:$0xff]  ;;  %s1490_s19 = scalar_lea.vmem %s1489_s8, 256  ;;  %p1491_p12 = scmp.lt.s32.totalorder %s1092_s27, %s1489_s8 }
  0x3b   : > { %409 = vmatprep.subr.bf16.mxu1 %v1408_v12  ;;  %p1486_p10 = pnand %p1485_p9, %p1620_p5  ;;  %p1492_p13 = scmp.lt.s32.totalorder %s1490_s19, %s1484_s6 }
  0x3d   : > { %1291 = vmatpush3.bf16.msra.mxu0 %v1422_v27  ;;  %p1487_p11 = pneg %p1486_p10  ;;  %p1493_p0 = por %p1492_p13, %p1491_p12 }
  0x3e   : > { %410 = vmatpush1.bf16.msra.mxu1 %v1406_v13  ;;  %1292 = vmatprep.subr.bf16.mxu0 %v1553_v0  ;;  %v1444_v13 = vld [vmem:[#allocation2 + $0xa0] ss:$8 sps:$4 sm:$0xff]  }
  0x3f   : > { %411 = vmatprep.subr.bf16.mxu1 %v1411_v14  ;;  %p1494_p1 = pnand %p1493_p0, %p1487_p11 }
  0x41   : > { %1293 = vmatpush3.bf16.msra.mxu0 %v1423_v28 }
  0x42   : > { %412 = vmatpush1.bf16.msra.mxu1 %v1409_v15  ;;  %1294 = vmatprep.subr.bf16.mxu0 %v1553_v0 }
  0x43   : > { %413 = vmatprep.subr.bf16.mxu1 %v1414_v16  ;;  %v1449_v16 = vld [vmem:[#allocation2 + $0x94] ss:$8 sps:$4 sm:$0xff]  }
  0x45   : > { %1295 = vmatpush3.bf16.msra.mxu0 %v1424_v29 }
  0x46   : > { %414 = vmatpush1.bf16.msra.mxu1 %v1412_v17  ;;  %1296 = vmatprep.subr.bf16.mxu0 %v1553_v0  ;;  %v1432_v0 = vld [vmem:[#allocation2 + $0xe0] ss:$8 sps:$4 sm:$0xff]  }
  0x47   : > { %415 = vmatprep.subr.bf16.mxu1 %v1417_v18  ;;  %v1447_v18 = vld [vmem:[#allocation2 + $0x90] ss:$8 sps:$4 sm:$0xff]  }
  0x49   : > { %1297 = vmatpush3.bf16.msra.mxu0 %v1425_v50 }
  0x4a   : > { %416 = vmatpush1.bf16.msra.mxu1 %v1415_v19  ;;  %753 = vmatprep.subr.bf16.mxu0 %v1428_v51 }
  0x4b   : > { %1336 = vmatprep.subr.msk.bf16.mxu1 %vm576_vm2, %v554_v21 }
  0xed   : > { %v297_v31 = vpop.f32.mrf.mxu1 }
  0xee   : > { %v298_v32 = vadd.f32 %v1184_v30, %v297_v31 }
  0xef   : > { %v1280_v35 = vpop.f32.mrf.mxu1 }
  0xf0   : > { %v303_v36 = vmax.f32 %v298_v32, 0.0 }
  0xf1   : > { %v300_v37 = vpop.f32.mrf.mxu1 }
  0xf2   : > { %v320_v39 = vpack.c.bf16 %v303_v36, %v303_v36 }
  0xf3   : > { %v1281_v40 = vpop.f32.mrf.mxu1 }
  0xf4   : > { %434 = vmatmul.mubr.bf16.vlgmr.msra.gmra.mxu1 %v320_v39 }
  0xf5   : > { %1303 = vmatpush3.bf16.msra.mxu1 %v578_v22  ;;  %1304 = vmatprep.mubr.msk.bf16.mxu1 %vm563_vm3, %v555_v38 }
  0xf6   : > { %1312 = vmatprep.subr.bf16.mxu1 %v1450_v41 }
  0xfc   : > { %1305 = vmatmul.mubr.msk.bf16.vlgmr.msra.gmra.mxu1 %vm563_vm3, %v556_v45  ;;  %v1454_v45 = vld [vmem:[#allocation2 + $0x144] ss:$8 sps:$4 sm:$0xff]  }
  0xfd   : > { %1308 = vmatprep.mubr.msk.bf16.mxu1 %vm563_vm3, %v557_v46  ;;  %1313 = vmatpush3.bf16.msra.mxu1 %v1450_v41  ;;  %v1456_v46 = vld [vmem:[#allocation2 + $0x124] ss:$8 sps:$4 sm:$0xff]  }
  0xfe   : > { %1314 = vmatprep.subr.bf16.mxu1 %v1451_v42 }
 0x101   : > { %1315 = vmatpush3.bf16.msra.mxu1 %v1451_v42 }
 0x102   : > { %1316 = vmatprep.subr.bf16.mxu1 %v1452_v43 }
 0x104   : > { %1309 = vmatmul.mubr.msk.bf16.gmra.mxu1 %vm563_vm3, %v558_v49 }
 0x105   : > { %1317 = vmatpush3.bf16.msra.mxu1 %v1452_v43 }
 0x106   : > { %1318 = vmatprep.subr.bf16.mxu1 %v1453_v44 }
 0x109   : > { %1319 = vmatpush3.bf16.msra.mxu1 %v1453_v44 }
 0x10a   : > { %1320 = vmatprep.subr.bf16.mxu1 %v1454_v45 }
 0x10d   : > { %1321 = vmatpush3.bf16.msra.mxu1 %v1454_v45 }
 0x1b4   : > { %v435_v53 = vpop.f32.mrf.mxu1 }
 0x1b5   : > { %v446_v54 = vadd.f32 %v1203_v52, %v435_v53  ;;  %v1233_v52 = vld [vmem:[%s1743_s3 + $0x3] ss:$0 sm:$0xff] }
 0x1b6   : > { %v1680_v55 = vpop.f32.mrf.mxu1 }
 0x1b7   : > { %v447_v56 = vmax.f32 %v446_v54, 0.0 }
 0x1b8   : > { %v439_v57 = vpop.f32.mrf.mxu1 }
 0x1b9   : > { %v464_v59 = vpack.c.bf16 %v447_v56, %v447_v56 }
 0x1ba   : > { %v440_v61 = vpop.f32.mrf.mxu1 }
 0x1bb   : > { %1299 = vmatmul.mubr.bf16.vlgmr.msra.gmra.mxu0 %v464_v59 }
 0x1bc   : > { %754 = vmatpush1.bf16.msra.mxu0 %v1426_v58  ;;  %785 = vmatprep.mubr.bf16.mxu0 %v1555_v20  ;;  %v1306_v2 = vpop.f32.mrf.mxu1 }
 0x1bd   : > { %755 = vmatprep.subr.bf16.mxu0 %v1431_v60  ;;  %v623_v23 = vadd.f32 %v1306_v2, %v1212_v11 }
 0x1be   : > { %v614_v5 = vpop.f32.mrf.mxu1 }
 0x1bf   : > { %v615_v14 = vadd.f32 %v1212_v11, %v614_v5  ;;  %v647_v27 = vmax.f32 %v623_v23, 0.0 }
 0x1c0   : > { %756 = vmatpush1.bf16.msra.mxu0 %v1429_v62  ;;  %v1307_v8 = vpop.f32.mrf.mxu1 }
 0x1c1   : > { %757 = vmatprep.subr.bf16.mxu0 %v1434_v63  ;;  %v645_v19 = vmax.f32 %v615_v14, 0.0  ;;  %v626_v24 = vadd.f32 %v1307_v8, %v1212_v11 }
 0x1c2   : > { %v617_v12 = vpop.f32.mrf.mxu1 }
 0x1c3   : > { %v618_v15 = vadd.f32 %v1212_v11, %v617_v12  ;;  %v648_v28 = vmax.f32 %v626_v24, 0.0 }
 0x1c4   : > { %758 = vmatpush1.bf16.msra.mxu0 %v1432_v0  ;;  %v1310_v17 = vpop.f32.mrf.mxu1 }
 0x1c5   : > { %759 = vmatprep.subr.bf16.mxu0 %v1437_v1  ;;  %v646_v21 = vmax.f32 %v618_v15, 0.0  ;;  %v670_v30 = vpack.c.bf16 %v648_v28, %v647_v27  ;;  %v639_v35 = vadd.f32 %v1310_v17, %v1212_v11 }
 0x1c6   : > { %v630_v22 = vpop.f32.mrf.mxu1 }
 0x1c7   : > { %v669_v25 = vpack.c.bf16 %v646_v21, %v645_v19  ;;  %v631_v31 = vadd.f32 %v1212_v11, %v630_v22  ;;  %v651_v38 = vmax.f32 %v639_v35, 0.0 }
 0x1c8   : > { %760 = vmatpush1.bf16.msra.mxu0 %v1435_v3  ;;  %v1311_v26 = vpop.f32.mrf.mxu1 }
 0x1c9   : > { %761 = vmatprep.subr.bf16.mxu0 %v1440_v4  ;;  %v649_v33 = vmax.f32 %v631_v31, 0.0  ;;  %v642_v36 = vadd.f32 %v1311_v26, %v1212_v11 }
 0x1ca   : > { %v633_v29 = vpop.f32.mrf.mxu1 }
 0x1cb   : > { %v634_v32 = vadd.f32 %v1212_v11, %v633_v29  ;;  %v652_v39 = vmax.f32 %v642_v36, 0.0 }
 0x1cc   : > { %762 = vmatpush1.bf16.msra.mxu0 %v1438_v6 }
 0x1cd   : > { %763 = vmatprep.subr.bf16.mxu0 %v1443_v7  ;;  %v650_v34 = vmax.f32 %v634_v32, 0.0  ;;  %v672_v40 = vpack.c.bf16 %v652_v39, %v651_v38 }
 0x1cf   : > { %v671_v37 = vpack.c.bf16 %v650_v34, %v649_v33 }
 0x1d0   : > { %764 = vmatpush1.bf16.msra.mxu0 %v1441_v9 }
 0x1d1   : > { %765 = vmatprep.subr.bf16.mxu0 %v1446_v10 }
 0x1d4   : > { %766 = vmatpush1.bf16.msra.mxu0 %v1444_v13 }
 0x1d5   : > { %767 = vmatprep.subr.bf16.mxu0 %v1449_v16 }
 0x1d8   : > { %768 = vmatpush1.bf16.msra.mxu0 %v1447_v18 }
 0x1db   : > { %786 = vmatmul.mubr.bf16.vlgmr.msra.gmra.mxu0 %v669_v25 }
 0x1dc   : > { %795 = vmatprep.mubr.bf16.mxu0 %v1555_v20 }
 0x1e3   : > { %796 = vmatmul.mubr.bf16.gmra.mxu0 %v670_v30 }
 0x1e4   : > { %805 = vmatprep.mubr.bf16.mxu0 %v1555_v20 }
 0x1eb   : > { %806 = vmatmul.mubr.bf16.gmra.mxu0 %v671_v37 }
 0x1ec   : > { %815 = vmatprep.mubr.bf16.mxu0 %v1555_v20  ;;  %v1455_v20 = vld [vmem:[#allocation2 + $0x134] ss:$8 sps:$4 sm:$0xff]  }
 0x1ed   : > { %1322 = vmatprep.subr.bf16.mxu1 %v1455_v20 }
 0x1ee   : > { %1323 = vmatpush3.bf16.msra.mxu1 %v1455_v20 }
 0x1ef   : > { %1324 = vmatprep.subr.bf16.mxu1 %v1456_v46 }
 0x1f2   : > { %1325 = vmatpush3.bf16.msra.mxu1 %v1456_v46 }
 0x1f3   : > { %816 = vmatmul.mubr.bf16.gmra.mxu0 %v672_v40  ;;  %1326 = vmatprep.subr.bf16.mxu1 %v1457_v47 }
 0x1f6   : > { %1327 = vmatpush3.bf16.msra.mxu1 %v1457_v47 }
 0x27b   : > { %v1689_v48 = vpop.f32.mrf.mxu0 }
 0x27d   : > { %v1300_v49 = vpop.f32.mrf.mxu0 }
 0x27f   : > { %v550_v50 = vpop.f32.mrf.mxu0 }
 0x281   : > { %v1301_v51 = vpop.f32.mrf.mxu0 }
 0x29b   : > { %v787_v53 = vpop.f32.mrf.mxu0 }
 0x29c   : > { %v830_v56 = vadd.f32 %v1233_v52, %v787_v53 }
 0x29d   : > { %v789_v54 = vpop.f32.mrf.mxu0 }
 0x29e   : > { %v838_v60 = vmax.f32 %v830_v56, 0.0 }
 0x29f   : > { %v791_v57 = vpop.f32.mrf.mxu0 }
 0x2a0   : > { %v831_v58 = vadd.f32 %v1233_v52, %v791_v57 }
 0x2a1   : > { %v793_v59 = vpop.f32.mrf.mxu0 }
 0x2a2   : > { %v839_v61 = vmax.f32 %v831_v58, 0.0 }
 0x2a3   : > { %v797_v62 = vpop.f32.mrf.mxu0 }
 0x2a4   : > { %v862_v63 = vpack.c.bf16 %v839_v61, %v838_v60  ;;  %v832_v1 = vadd.f32 %v1233_v52, %v797_v62 }
 0x2a5   : > { %v799_v0 = vpop.f32.mrf.mxu0 }
 0x2a6   : > { %1328 = vmatprep.mubr.bf16.mxu1 %v862_v63  ;;  %v840_v5 = vmax.f32 %v832_v1, 0.0 }
 0x2a7   : > { %v801_v2 = vpop.f32.mrf.mxu0 }
 0x2a8   : > { %v833_v3 = vadd.f32 %v1233_v52, %v801_v2 }
 0x2a9   : > { %v803_v4 = vpop.f32.mrf.mxu0 }
 0x2aa   : > { %v841_v6 = vmax.f32 %v833_v3, 0.0 }
 0x2ab   : > { %v807_v7 = vpop.f32.mrf.mxu0 }
 0x2ac   : > { %v863_v8 = vpack.c.bf16 %v841_v6, %v840_v5  ;;  %v834_v10 = vadd.f32 %v1233_v52, %v807_v7 }
 0x2ad   : > { %v809_v9 = vpop.f32.mrf.mxu0 }
 0x2ae   : > { %1329 = vmatmul.mubr.bf16.vlgmr.msra.gmra.mxu1 %v863_v8  ;;  %v842_v14 = vmax.f32 %v834_v10, 0.0 }
 0x2af   : > { %v811_v11 = vpop.f32.mrf.mxu0 }
 0x2b0   : > { %v835_v12 = vadd.f32 %v1233_v52, %v811_v11 }
 0x2b1   : > { %v813_v13 = vpop.f32.mrf.mxu0 }
 0x2b2   : > { %v843_v15 = vmax.f32 %v835_v12, 0.0 }
 0x2b3   : > { %v817_v16 = vpop.f32.mrf.mxu0 }
 0x2b4   : > { %v864_v17 = vpack.c.bf16 %v843_v15, %v842_v14  ;;  %v836_v19 = vadd.f32 %v1233_v52, %v817_v16 }
 0x2b5   : > { %v819_v18 = vpop.f32.mrf.mxu0 }
 0x2b6   : > { %1332 = vmatprep.mubr.bf16.mxu1 %v864_v17  ;;  %v844_v23 = vmax.f32 %v836_v19, 0.0 }
 0x2b7   : > { %v821_v21 = vpop.f32.mrf.mxu0 }
 0x2b8   : > { %v837_v22 = vadd.f32 %v1233_v52, %v821_v21  ;;  %v1242_v21 = vld [vmem:[%s1743_s3 + $0x5] ss:$0 sm:$0xff] }
 0x2b9   : > { %v823_v51 = vpop.f32.mrf.mxu0 }
 0x2ba   : > { %v845_v24 = vmax.f32 %v837_v22, 0.0  ;;  %v1038_v22 = vpop.permute.xlu0 %1037 }
 0x2bc   : > { %v865_v25 = vpack.c.bf16 %v845_v24, %v844_v23 }
 0x2be   : > { %1333 = vmatmul.mubr.bf16.gmra.mxu1 %v865_v25 }
 0x36e   : > { %v1330_v26 = vpop.f32.mrf.mxu1 }
 0x36f   : > { %v981_v31 = vadd.f32 %v1330_v26, %v799_v0 }
 0x370   : > { %v948_v27 = vpop.f32.mrf.mxu1 }
 0x371   : > { %v979_v28 = vadd.f32 %v948_v27, %v789_v54  ;;  %v999_v36 = vrot.slane %v981_v31, 4 }
 0x372   : > { %v1331_v29 = vpop.f32.mrf.mxu1 }
 0x373   : > { %v987_v33 = vrot.slane %v979_v28, 4  ;;  %v982_v35 = vadd.f32 %v1331_v29, %v803_v4  ;;  %v1000_v41 = vadd.f32 %v999_v36, %v981_v31  ;;  %v553_v31 = vadd.f32 %v1689_v48, %v1680_v55  ;;  %v1243_v55 = vld [vmem:[%s1743_s3 + $0x4] ss:$0 sm:$0xff] }
 0x374   : > { %v951_v30 = vpop.f32.mrf.mxu1 }
 0x375   : > { %v980_v32 = vadd.f32 %v951_v30, %v793_v59  ;;  %v988_v38 = vadd.f32 %v987_v33, %v979_v28  ;;  %v1005_v39 = vrot.slane %v982_v35, 4  ;;  %v1001_v47 = vrot.slane %v1000_v41, 2 }
 0x376   : > { %v1044_v30 = vmul.f32 %v1242_v21, %v1038_v22 }
 0x377   : > { %v993_v34 = vrot.slane %v980_v32, 4  ;;  %v989_v42 = vrot.slane %v988_v38, 2  ;;  %v1006_v45 = vadd.f32 %v1005_v39, %v982_v35  ;;  %v1002_v61 = vadd.f32 %v1001_v47, %v1000_v41 }
 0x379   : > { %v994_v37 = vadd.f32 %v993_v34, %v980_v32  ;;  %v990_v52 = vadd.f32 %v989_v42, %v988_v38  ;;  %v1007_v58 = vrot.slane %v1006_v45, 2  ;;  %v1003_v8 = vrot.slane %v1002_v61, 1 }
 0x37a   : > { %v1045_v38 = vadd.f32 %v1044_v30, %v553_v31 }
 0x37b   : > { %v995_v40 = vrot.slane %v994_v37, 2  ;;  %v991_v0 = vrot.slane %v990_v52, 1  ;;  %v1008_v5 = vadd.f32 %v1007_v58, %v1006_v45  ;;  %v1004_v19 = vadd.f32 %v1003_v8, %v1002_v61 }
 0x37d   : > { %v996_v20 = vadd.f32 %v995_v40, %v994_v37  ;;  %v992_v11 = vadd.f32 %v991_v0, %v990_v52  ;;  %v1009_v16 = vrot.slane %v1008_v5, 1 }
 0x37e   : > { %v1334_v43 = vpop.f32.mrf.mxu1 }
 0x37f   : > { %v985_v44 = vadd.f32 %v1334_v43, %v819_v18  ;;  %v997_v59 = vrot.slane %v996_v20, 1  ;;  %v1010_v27 = vadd.f32 %v1009_v16, %v1008_v5 }
 0x380   : > { %v964_v46 = vpop.f32.mrf.mxu1 }
 0x381   : > { %v1023_v49 = vrot.slane %v985_v44, 4  ;;  %v983_v50 = vadd.f32 %v964_v46, %v809_v9  ;;  %v998_v6 = vadd.f32 %v997_v59, %v996_v20 }
 0x382   : > { %v1335_v53 = vpop.f32.mrf.mxu1 }
 0x383   : > { %v1024_v54 = vadd.f32 %v1023_v49, %v985_v44  ;;  %v1011_v56 = vrot.slane %v983_v50, 4  ;;  %v986_v57 = vadd.f32 %v1335_v53, %v823_v51  ;;  %v1055_v17 = vsel %vm1054_vm4, %v998_v6, %v992_v11 }
 0x384   : > { %v967_v60 = vpop.f32.mrf.mxu1  ;;  %v1057_v24 = vsel %vm1056_vm5, %v1004_v19, %v1055_v17 }
 0x385   : > { %v1012_v62 = vadd.f32 %v1011_v56, %v983_v50  ;;  %v1029_v63 = vrot.slane %v986_v57, 4  ;;  %v984_v1 = vadd.f32 %v967_v60, %v813_v13  ;;  %v1025_v2 = vrot.slane %v1024_v54, 2 }
 0x386   : > { %v1059_v32 = vsel %vm1058_vm6, %v1010_v27, %v1057_v24 }
 0x387   : > { %v1013_v3 = vrot.slane %v1012_v62, 2  ;;  %v1030_v4 = vadd.f32 %v1029_v63, %v986_v57  ;;  %v1017_v7 = vrot.slane %v984_v1, 4  ;;  %v1026_v14 = vadd.f32 %v1025_v2, %v1024_v54 }
 0x389   : > { %v1014_v9 = vadd.f32 %v1013_v3, %v1012_v62  ;;  %v1031_v10 = vrot.slane %v1030_v4, 2  ;;  %v1018_v12 = vadd.f32 %v1017_v7, %v984_v1  ;;  %v1027_v25 = vrot.slane %v1026_v14, 1 }
 0x38b   : > { %v1015_v15 = vrot.slane %v1014_v9, 1  ;;  %v1032_v18 = vadd.f32 %v1031_v10, %v1030_v4  ;;  %v1019_v13 = vrot.slane %v1018_v12, 2  ;;  %v1028_v34 = vadd.f32 %v1027_v25, %v1026_v14 }
 0x38d   : > { %v1020_v23 = vadd.f32 %v1019_v13, %v1018_v12  ;;  %v1016_v26 = vadd.f32 %v1015_v15, %v1014_v9  ;;  %v1033_v28 = vrot.slane %v1032_v18, 1 }
 0x38f   : > { %v1021_v29 = vrot.slane %v1020_v23, 1  ;;  %v1061_v35 = vsel %vm1060_vm7, %v1016_v26, %v1059_v32  ;;  %v1034_v36 = vadd.f32 %v1033_v28, %v1032_v18 }
 0x391   : > { %v1022_v33 = vadd.f32 %v1021_v29, %v1020_v23 }
 0x393   : > { %v1063_v37 = vsel %vm1062_vm8, %v1022_v33, %v1061_v35 }
 0x394   : > { %v1065_v39 = vsel %vm1064_vm9, %v1028_v34, %v1063_v37 }
 0x395   : > { %v1067_v48 = vsel %vm1066_vm10, %v1034_v36, %v1065_v39 }
 0x396   : > { %v1069_v40 = vadd.f32 %v1067_v48, %v1045_v38 }
 0x398   : > { %v1074_v41 = vadd.f32 %v1243_v55, %v1069_v40 }
 0x39a   : > { %v1075_v42 = vmax.f32 %v1074_v41, 0.0 }
 0x39c   : > { %1076 = vst [vmem:[%s219_s23] sm:$0xff] %v1075_v42 }
 0x39d   : > { %1497 = shalt.err (!%p1494_p1)
}
 0x39e   : > { %s1498_s9 = scalar_lea.hbm %s1089_s30, 128  ;;  %s1502_s12 = scalar_lea.hbm %s1744_s4, 256 }
 0x39f   : > { %p1499_p2 = scmp.ne.s32.totalorder %s1089_s30, %s1498_s9  ;;  %p1503_p7 = scmp.lt.s32.totalorder %s1089_s30, %s1744_s4 }
 0x3a0   : > { %p1504_p8 = scmp.lt.s32.totalorder %s1502_s12, %s1498_s9 }
 0x3a1   : > { %p1500_p3 = pnand %p1499_p2, %p1620_p5 }
 0x3a2   : > { %p1505_p6 = por %p1504_p8, %p1503_p7 }
 0x3a3   : > { %p1501_p4 = pneg %p1500_p3 }
 0x3a5   : > { %p1506_p9 = pnand %p1505_p6, %p1501_p4 }
 0x3a7   : > { %1509 = shalt.err (!%p1506_p9)
}
 0x3a8   : > { %1341 = dma.vmem_to_hbm [thread:$0]  (%p1620_p5), %s1092_s27, 128, %s1089_s30, %s1078_s5  }
 0x3a9 PF: > { %p1353_p10 = scmp.ge.s32.totalorder %s1548_s18, 2  ;;  %s1103_s20 = sand.u32 1, %s1536_s15  }
 0x3aa   : > { %p1748_p11 = scmp.ne.s32.totalorder %s1746_s26, 0  ;;  %s1104_s22 = scalar_lea.sflag [#allocation4], %s1103_s20 }
 0x3ac   : > { %p1348_p12 = pnand %p1353_p10, %p1748_p11 }
 0x3ae   : > { %p1349_p13 = pneg %p1348_p12 }
 0x3b0   : > { %1531 = dma.done.wait (%p1349_p13), %s1104_s22, 128  }
 0x3b1   : > { %1533 = vsyncadd (%p1349_p13), %s1104_s22, 4294967168  ;;  %p15_p0 = scmp.ge.s32.totalorder %s1607_s21, 4   ;;  %s1749_s15 = smov %s1540_s16 }
 0x3b2   : > { %s1750_s16 = smov %s1544_s17  ;;  %s1751_s17 = smov %s1618_s24 }
 0x3b3   : > { %s1752_s18 = smov %s1607_s21  ;;  %17 = sbr.rel (!%p15_p0) target bundleno = 4 (0x4), region = 79 }
 0x3b8   :  { %1109 = vsyncpa [#allocation3], 1 }
 0x3b9   :  { %1111 = vsyncpa [#allocation3 + $0x1], 1 }
 0x3ba   :  { %1112 = vsyncpa [#allocation4], 1 }
 0x3bb   :  { %1114 = vsyncpa [#allocation4 + $0x1], 1 }

</bundles_post_ra>
